<compile_context>
chip_gen: v5e
topology: v5e:2x2
jax: 0.10.0
libtpu: 0.0.40
codegen_flags: <defaults>
</compile_context>

<pallas_src>
import jax
import jax.numpy as jnp
from jax import lax
from jax.experimental import pallas as pl
from jax.experimental.pallas import tpu as pltpu

N_LAYERS = 2


def _sigmoid(x):
    # Single-EUP form: sigmoid(x) = 0.5 * tanh(0.5 * x) + 0.5
    return 0.5 * jnp.tanh(0.5 * x) + 0.5


def hsn_kernel(x0_ref, op_ref, w_ref, wlin_ref, blin_ref, out_ref):
    """Whole-graph HSN forward in VMEM (small graph: single grid point).

    x0_ref   : [N, C]      bf16  node features
    op_ref   : [N, N+E]    bf16  op = [adjacency_0 | incidence_1]
    w_ref    : [L, C, 4C]  bf16  lane-dense per-layer pack [W1|W2|W3|W4]
    wlin_ref : [C, 2]      bf16  final linear weight
    blin_ref : [1, 2]      f32   final linear bias
    out_ref  : [N, 2]      f32   softmax probabilities
    """
    n = x0_ref.shape[0]
    c = x0_ref.shape[1]
    n_layers = w_ref.shape[0]
    bf16 = jnp.bfloat16

    op = op_ref[...]           # [N, N+E] = [A | B]
    adj = op[:, :n]            # [N, N]
    inc = op[:, n:]            # [N, E]
    x = x0_ref[...]            # [N, C] bf16

    for layer in range(n_layers):
        w_l = w_ref[layer]              # [C, 4C] bf16 (static index)
        w12 = w_l[:, : 2 * c]           # [C, 2C] = [W1 | W2]
        w3 = w_l[:, 2 * c: 3 * c]       # [C, C]
        w4 = w_l[:, 3 * c:]             # [C, C]

        # level-1: single fused x @ [W1|W2] (f32 accumulate), split lanes.
        xw12 = jnp.dot(x, w12, preferred_element_type=jnp.float32).astype(bf16)
        xw1 = xw12[:, :c]
        xw2 = xw12[:, c:]

        # sigmoid(A @ (x W1))
        x_0_level1 = _sigmoid(
            jnp.dot(adj, xw1, preferred_element_type=jnp.float32))
        # sigmoid(B^T @ (x W2)) without materialising B^T:
        # contract inc's row (node) dim with xw2's row dim -> [E, C].
        x_1_level1 = _sigmoid(
            lax.dot_general(inc, xw2, (((0,), (0,)), ((), ())),
                            preferred_element_type=jnp.float32))

        # level-2, fused: [A | B] @ [x_0_level1 W3 ; x_1_level1 W4]  (+ sigmoid)
        r0 = jnp.dot(x_0_level1.astype(bf16), w3,
                     preferred_element_type=jnp.float32)          # [N, C]
        r1 = jnp.dot(x_1_level1.astype(bf16), w4,
                     preferred_element_type=jnp.float32)          # [E, C]
        rhs = jnp.concatenate([r0, r1], axis=0).astype(bf16)      # [N+E, C]
        x = _sigmoid(
            jnp.dot(op, rhs, preferred_element_type=jnp.float32)).astype(bf16)

    # final Linear(C -> 2) + 2-class softmax via sigmoid of the logit diff.
    logits = jnp.dot(x, wlin_ref[...],
                     preferred_element_type=jnp.float32) + blin_ref[...]
    p0 = _sigmoid(logits[:, 0:1] - logits[:, 1:2])                # [N, 1]
    out_ref[...] = jnp.concatenate([p0, 1.0 - p0], axis=1)        # [N, 2]


@jax.jit
def hsn_forward(x_0, incidence_1, adjacency_0, layer_weights, w_lin, b_lin):
    """Wrapper: repack operands (bf16, lane-dense weights) and call the kernel.

    Operator entries are in {-1, 0, 1} so the bf16 cast of adj/inc is exact;
    feature/weight casts trade ~3 decimal digits for the fast bf16 MXU path
    (accumulation stays f32 inside the kernel).
    """
    n_nodes, channels = x_0.shape
    bf16 = jnp.bfloat16

    # Fused level-2 operator: [A | B], built once outside the layer loop.
    op = jnp.concatenate([adjacency_0, incidence_1], axis=1).astype(bf16)

    # Lane-dense per-layer weight slab: [L, C, 4C] = [W1 | W2 | W3 | W4].
    w_packed = jnp.concatenate(
        [layer_weights[:, 0], layer_weights[:, 1],
         layer_weights[:, 2], layer_weights[:, 3]], axis=-1).astype(bf16)

    vmem = pl.BlockSpec(memory_space=pltpu.MemorySpace.VMEM)
    # TODO(synk): if this forward is executed for many graphs, stack graphs on a
    # leading grid axis marked "parallel" to amortize launch/DMA fixed cost.
    return pl.pallas_call(
        hsn_kernel,
        out_shape=jax.ShapeDtypeStruct((n_nodes, 2), jnp.float32),
        in_specs=[vmem] * 5,
        out_specs=vmem,
    )(x_0.astype(bf16), op, w_packed, w_lin.astype(bf16),
      b_lin.astype(jnp.float32))


def _reference(x_0, incidence_1, adjacency_0, layer_weights, w_lin, b_lin):
    """Pure-JAX f32 reference matching the PyTorch module semantics."""
    x = x_0
    for layer in range(N_LAYERS):
        w1, w2, w3, w4 = (layer_weights[layer, i] for i in range(4))
        x_0_level1 = jax.nn.sigmoid(adjacency_0 @ (x @ w1))
        x_1_level1 = jax.nn.sigmoid(incidence_1.T @ (x @ w2))
        x_0_level2 = adjacency_0 @ (x_0_level1 @ w3)
        x_0_level2_bis = incidence_1 @ (x_1_level1 @ w4)
        x = jax.nn.sigmoid(x_0_level2 + x_0_level2_bis)
    logits = x @ w_lin + b_lin
    return jax.nn.softmax(logits, axis=-1)


def _xavier_uniform(key, shape, gain=1.414):
    fan_in, fan_out = shape[-2], shape[-1]
    bound = gain * (6.0 / (fan_in + fan_out)) ** 0.5
    return jax.random.uniform(key, shape, jnp.float32, -bound, bound)


if __name__ == "__main__":
    n_nodes, n_edges, channels = 16, 24, 32

    key = jax.random.PRNGKey(0)
    k_x, k_inc, k_adj, k_w, k_lin, k_b = jax.random.split(key, 6)

    x_0 = jax.random.normal(k_x, (n_nodes, channels), jnp.float32)
    # synthetic boundary matrix (entries in {-1, 0, 1}) and symmetric adjacency
    incidence_1 = jnp.round(
        jax.random.uniform(k_inc, (n_nodes, n_edges), jnp.float32, -1.0, 1.0))
    adjacency_0 = (jax.random.uniform(k_adj, (n_nodes, n_nodes))
                   > 0.6).astype(jnp.float32)
    adjacency_0 = jnp.maximum(adjacency_0, adjacency_0.T)

    # per-layer Conv weights: [n_layers, 4, C, C], xavier_uniform(gain=1.414)
    layer_weights = _xavier_uniform(k_w, (N_LAYERS, 4, channels, channels))
    # final Linear(channels, 2): weight stored as [C, 2], bias as [1, 2]
    w_lin = _xavier_uniform(k_lin, (channels, 2), gain=1.0)
    b_lin = jax.random.uniform(k_b, (1, 2), jnp.float32, -0.1, 0.1)

    out = hsn_forward(x_0, incidence_1, adjacency_0, layer_weights, w_lin,
                      b_lin)
    out = jax.block_until_ready(out)

    ref = _reference(x_0, incidence_1, adjacency_0, layer_weights, w_lin,
                     b_lin)
    assert out.shape == (n_nodes, 2)
    # bf16 MXU operands (f32 accumulation) vs the pure-f32 reference: allow a
    # modest absolute tolerance on the 2-class probabilities.
    max_err = float(jnp.max(jnp.abs(out - ref)))
    assert jnp.allclose(out, ref, atol=4e-2), f"max abs err {max_err}"

    print("KERNEL_OK")
</pallas_src>

<mosaic_0001>
module attributes {stable_mosaic.version = 11 : i64} {
  func.func @hsn_kernel(%arg0: memref<16x32xbf16, #tpu.memory_space<vmem>>, %arg1: memref<16x40xbf16, #tpu.memory_space<vmem>>, %arg2: memref<2x32x128xbf16, #tpu.memory_space<vmem>>, %arg3: memref<32x2xbf16, #tpu.memory_space<vmem>>, %arg4: memref<1x2xf32, #tpu.memory_space<vmem>>, %arg5: memref<16x2xf32, #tpu.memory_space<vmem>>) attributes {dimension_semantics = [], scalar_prefetch = 0 : i64, scratch_operands = 0 : i64, tpu.core_type = #tpu.core_type<tc>} {
    %c0 = arith.constant 0 : index
    %c0_0 = arith.constant 0 : index
    %0 = vector.load %arg1[%c0, %c0_0] : memref<16x40xbf16, #tpu.memory_space<vmem>>, vector<16x40xbf16>
    %1 = vector.extract_strided_slice %0 {offsets = [0, 0], sizes = [16, 16], strides = [1, 1]} : vector<16x40xbf16> to vector<16x16xbf16>
    %2 = vector.extract_strided_slice %0 {offsets = [0, 16], sizes = [16, 24], strides = [1, 1]} : vector<16x40xbf16> to vector<16x24xbf16>
    %c0_1 = arith.constant 0 : index
    %c0_2 = arith.constant 0 : index
    %3 = vector.load %arg0[%c0_1, %c0_2] : memref<16x32xbf16, #tpu.memory_space<vmem>>, vector<16x32xbf16>
    %c0_3 = arith.constant 0 : index
    %c0_4 = arith.constant 0 : index
    %c0_5 = arith.constant 0 : index
    %4 = vector.load %arg2[%c0_3, %c0_4, %c0_5] : memref<2x32x128xbf16, #tpu.memory_space<vmem>>, vector<1x32x128xbf16>
    %5 = vector.shape_cast %4 : vector<1x32x128xbf16> to vector<32x128xbf16>
    %6 = vector.extract_strided_slice %5 {offsets = [0, 0], sizes = [32, 64], strides = [1, 1]} : vector<32x128xbf16> to vector<32x64xbf16>
    %7 = vector.extract_strided_slice %5 {offsets = [0, 64], sizes = [32, 32], strides = [1, 1]} : vector<32x128xbf16> to vector<32x32xbf16>
    %8 = vector.extract_strided_slice %5 {offsets = [0, 96], sizes = [32, 32], strides = [1, 1]} : vector<32x128xbf16> to vector<32x32xbf16>
    %cst = arith.constant dense<0.000000e+00> : vector<16x64xf32>
    %9 = tpu.matmul %3, %6, %cst {dimension_numbers = #tpu.dot_dimension_numbers<[1], [0], [0], [1], [0, 0, 1, 1], [], []>} : vector<16x32xbf16>, vector<32x64xbf16>, vector<16x64xf32> -> vector<16x64xf32>
    %10 = arith.truncf %9 : vector<16x64xf32> to vector<16x64xbf16>
    %11 = vector.extract_strided_slice %10 {offsets = [0, 0], sizes = [16, 32], strides = [1, 1]} : vector<16x64xbf16> to vector<16x32xbf16>
    %12 = vector.extract_strided_slice %10 {offsets = [0, 32], sizes = [16, 32], strides = [1, 1]} : vector<16x64xbf16> to vector<16x32xbf16>
    %cst_6 = arith.constant dense<0.000000e+00> : vector<16x32xf32>
    %13 = tpu.matmul %1, %11, %cst_6 {dimension_numbers = #tpu.dot_dimension_numbers<[1], [0], [0], [1], [0, 0, 1, 1], [], []>} : vector<16x16xbf16>, vector<16x32xbf16>, vector<16x32xf32> -> vector<16x32xf32>
    %cst_7 = arith.constant 5.000000e-01 : f32
    %14 = vector.broadcast %cst_7 : f32 to vector<16x32xf32>
    %15 = arith.mulf %14, %13 : vector<16x32xf32>
    %16 = math.tanh %15 : vector<16x32xf32>
    %cst_8 = arith.constant 5.000000e-01 : f32
    %17 = vector.broadcast %cst_8 : f32 to vector<16x32xf32>
    %18 = arith.mulf %17, %16 : vector<16x32xf32>
    %cst_9 = arith.constant 5.000000e-01 : f32
    %19 = vector.broadcast %cst_9 : f32 to vector<16x32xf32>
    %20 = arith.addf %18, %19 : vector<16x32xf32>
    %cst_10 = arith.constant dense<0.000000e+00> : vector<24x32xf32>
    %21 = tpu.matmul %2, %12, %cst_10 {dimension_numbers = #tpu.dot_dimension_numbers<[0], [0], [1], [1], [0, 1, 1, 1], [], []>} : vector<16x24xbf16>, vector<16x32xbf16>, vector<24x32xf32> -> vector<24x32xf32>
    %cst_11 = arith.constant 5.000000e-01 : f32
    %22 = vector.broadcast %cst_11 : f32 to vector<24x32xf32>
    %23 = arith.mulf %22, %21 : vector<24x32xf32>
    %24 = math.tanh %23 : vector<24x32xf32>
    %cst_12 = arith.constant 5.000000e-01 : f32
    %25 = vector.broadcast %cst_12 : f32 to vector<24x32xf32>
    %26 = arith.mulf %25, %24 : vector<24x32xf32>
    %cst_13 = arith.constant 5.000000e-01 : f32
    %27 = vector.broadcast %cst_13 : f32 to vector<24x32xf32>
    %28 = arith.addf %26, %27 : vector<24x32xf32>
    %29 = arith.truncf %20 : vector<16x32xf32> to vector<16x32xbf16>
    %cst_14 = arith.constant dense<0.000000e+00> : vector<16x32xf32>
    %30 = tpu.matmul %29, %7, %cst_14 {dimension_numbers = #tpu.dot_dimension_numbers<[1], [0], [0], [1], [0, 0, 1, 1], [], []>} : vector<16x32xbf16>, vector<32x32xbf16>, vector<16x32xf32> -> vector<16x32xf32>
    %31 = arith.truncf %28 : vector<24x32xf32> to vector<24x32xbf16>
    %cst_15 = arith.constant dense<0.000000e+00> : vector<24x32xf32>
    %32 = tpu.matmul %31, %8, %cst_15 {dimension_numbers = #tpu.dot_dimension_numbers<[1], [0], [0], [1], [0, 0, 1, 1], [], []>} : vector<24x32xbf16>, vector<32x32xbf16>, vector<24x32xf32> -> vector<24x32xf32>
    %33 = tpu.concatenate %30, %32 in 0 : vector<16x32xf32>, vector<24x32xf32> -> vector<40x32xf32>
    %34 = arith.truncf %33 : vector<40x32xf32> to vector<40x32xbf16>
    %cst_16 = arith.constant dense<0.000000e+00> : vector<16x32xf32>
    %35 = tpu.matmul %0, %34, %cst_16 {dimension_numbers = #tpu.dot_dimension_numbers<[1], [0], [0], [1], [0, 0, 1, 1], [], []>} : vector<16x40xbf16>, vector<40x32xbf16>, vector<16x32xf32> -> vector<16x32xf32>
    %cst_17 = arith.constant 5.000000e-01 : f32
    %36 = vector.broadcast %cst_17 : f32 to vector<16x32xf32>
    %37 = arith.mulf %36, %35 : vector<16x32xf32>
    %38 = math.tanh %37 : vector<16x32xf32>
    %cst_18 = arith.constant 5.000000e-01 : f32
    %39 = vector.broadcast %cst_18 : f32 to vector<16x32xf32>
    %40 = arith.mulf %39, %38 : vector<16x32xf32>
    %cst_19 = arith.constant 5.000000e-01 : f32
    %41 = vector.broadcast %cst_19 : f32 to vector<16x32xf32>
    %42 = arith.addf %40, %41 : vector<16x32xf32>
    %43 = arith.truncf %42 : vector<16x32xf32> to vector<16x32xbf16>
    %c1 = arith.constant 1 : index
    %c0_20 = arith.constant 0 : index
    %c0_21 = arith.constant 0 : index
    %44 = vector.load %arg2[%c1, %c0_20, %c0_21] : memref<2x32x128xbf16, #tpu.memory_space<vmem>>, vector<1x32x128xbf16>
    %45 = vector.shape_cast %44 : vector<1x32x128xbf16> to vector<32x128xbf16>
    %46 = vector.extract_strided_slice %45 {offsets = [0, 0], sizes = [32, 64], strides = [1, 1]} : vector<32x128xbf16> to vector<32x64xbf16>
    %47 = vector.extract_strided_slice %45 {offsets = [0, 64], sizes = [32, 32], strides = [1, 1]} : vector<32x128xbf16> to vector<32x32xbf16>
    %48 = vector.extract_strided_slice %45 {offsets = [0, 96], sizes = [32, 32], strides = [1, 1]} : vector<32x128xbf16> to vector<32x32xbf16>
    %cst_22 = arith.constant dense<0.000000e+00> : vector<16x64xf32>
    %49 = tpu.matmul %43, %46, %cst_22 {dimension_numbers = #tpu.dot_dimension_numbers<[1], [0], [0], [1], [0, 0, 1, 1], [], []>} : vector<16x32xbf16>, vector<32x64xbf16>, vector<16x64xf32> -> vector<16x64xf32>
    %50 = arith.truncf %49 : vector<16x64xf32> to vector<16x64xbf16>
    %51 = vector.extract_strided_slice %50 {offsets = [0, 0], sizes = [16, 32], strides = [1, 1]} : vector<16x64xbf16> to vector<16x32xbf16>
    %52 = vector.extract_strided_slice %50 {offsets = [0, 32], sizes = [16, 32], strides = [1, 1]} : vector<16x64xbf16> to vector<16x32xbf16>
    %cst_23 = arith.constant dense<0.000000e+00> : vector<16x32xf32>
    %53 = tpu.matmul %1, %51, %cst_23 {dimension_numbers = #tpu.dot_dimension_numbers<[1], [0], [0], [1], [0, 0, 1, 1], [], []>} : vector<16x16xbf16>, vector<16x32xbf16>, vector<16x32xf32> -> vector<16x32xf32>
    %cst_24 = arith.constant 5.000000e-01 : f32
    %54 = vector.broadcast %cst_24 : f32 to vector<16x32xf32>
    %55 = arith.mulf %54, %53 : vector<16x32xf32>
    %56 = math.tanh %55 : vector<16x32xf32>
    %cst_25 = arith.constant 5.000000e-01 : f32
    %57 = vector.broadcast %cst_25 : f32 to vector<16x32xf32>
    %58 = arith.mulf %57, %56 : vector<16x32xf32>
    %cst_26 = arith.constant 5.000000e-01 : f32
    %59 = vector.broadcast %cst_26 : f32 to vector<16x32xf32>
    %60 = arith.addf %58, %59 : vector<16x32xf32>
    %cst_27 = arith.constant dense<0.000000e+00> : vector<24x32xf32>
    %61 = tpu.matmul %2, %52, %cst_27 {dimension_numbers = #tpu.dot_dimension_numbers<[0], [0], [1], [1], [0, 1, 1, 1], [], []>} : vector<16x24xbf16>, vector<16x32xbf16>, vector<24x32xf32> -> vector<24x32xf32>
    %cst_28 = arith.constant 5.000000e-01 : f32
    %62 = vector.broadcast %cst_28 : f32 to vector<24x32xf32>
    %63 = arith.mulf %62, %61 : vector<24x32xf32>
    %64 = math.tanh %63 : vector<24x32xf32>
    %cst_29 = arith.constant 5.000000e-01 : f32
    %65 = vector.broadcast %cst_29 : f32 to vector<24x32xf32>
    %66 = arith.mulf %65, %64 : vector<24x32xf32>
    %cst_30 = arith.constant 5.000000e-01 : f32
    %67 = vector.broadcast %cst_30 : f32 to vector<24x32xf32>
    %68 = arith.addf %66, %67 : vector<24x32xf32>
    %69 = arith.truncf %60 : vector<16x32xf32> to vector<16x32xbf16>
    %cst_31 = arith.constant dense<0.000000e+00> : vector<16x32xf32>
    %70 = tpu.matmul %69, %47, %cst_31 {dimension_numbers = #tpu.dot_dimension_numbers<[1], [0], [0], [1], [0, 0, 1, 1], [], []>} : vector<16x32xbf16>, vector<32x32xbf16>, vector<16x32xf32> -> vector<16x32xf32>
    %71 = arith.truncf %68 : vector<24x32xf32> to vector<24x32xbf16>
    %cst_32 = arith.constant dense<0.000000e+00> : vector<24x32xf32>
    %72 = tpu.matmul %71, %48, %cst_32 {dimension_numbers = #tpu.dot_dimension_numbers<[1], [0], [0], [1], [0, 0, 1, 1], [], []>} : vector<24x32xbf16>, vector<32x32xbf16>, vector<24x32xf32> -> vector<24x32xf32>
    %73 = tpu.concatenate %70, %72 in 0 : vector<16x32xf32>, vector<24x32xf32> -> vector<40x32xf32>
    %74 = arith.truncf %73 : vector<40x32xf32> to vector<40x32xbf16>
    %cst_33 = arith.constant dense<0.000000e+00> : vector<16x32xf32>
    %75 = tpu.matmul %0, %74, %cst_33 {dimension_numbers = #tpu.dot_dimension_numbers<[1], [0], [0], [1], [0, 0, 1, 1], [], []>} : vector<16x40xbf16>, vector<40x32xbf16>, vector<16x32xf32> -> vector<16x32xf32>
    %cst_34 = arith.constant 5.000000e-01 : f32
    %76 = vector.broadcast %cst_34 : f32 to vector<16x32xf32>
    %77 = arith.mulf %76, %75 : vector<16x32xf32>
    %78 = math.tanh %77 : vector<16x32xf32>
    %cst_35 = arith.constant 5.000000e-01 : f32
    %79 = vector.broadcast %cst_35 : f32 to vector<16x32xf32>
    %80 = arith.mulf %79, %78 : vector<16x32xf32>
    %cst_36 = arith.constant 5.000000e-01 : f32
    %81 = vector.broadcast %cst_36 : f32 to vector<16x32xf32>
    %82 = arith.addf %80, %81 : vector<16x32xf32>
    %83 = arith.truncf %82 : vector<16x32xf32> to vector<16x32xbf16>
    %c0_37 = arith.constant 0 : index
    %c0_38 = arith.constant 0 : index
    %84 = vector.load %arg3[%c0_37, %c0_38] : memref<32x2xbf16, #tpu.memory_space<vmem>>, vector<32x2xbf16>
    %cst_39 = arith.constant dense<0.000000e+00> : vector<16x2xf32>
    %85 = tpu.matmul %83, %84, %cst_39 {dimension_numbers = #tpu.dot_dimension_numbers<[1], [0], [0], [1], [0, 0, 1, 1], [], []>} : vector<16x32xbf16>, vector<32x2xbf16>, vector<16x2xf32> -> vector<16x2xf32>
    %c0_40 = arith.constant 0 : index
    %c0_41 = arith.constant 0 : index
    %86 = vector.load %arg4[%c0_40, %c0_41] : memref<1x2xf32, #tpu.memory_space<vmem>>, vector<1x2xf32>
    %87 = vector.broadcast %86 : vector<1x2xf32> to vector<16x2xf32>
    %88 = arith.addf %85, %87 : vector<16x2xf32>
    %89 = vector.extract_strided_slice %88 {offsets = [0, 0], sizes = [16, 1], strides = [1, 1]} : vector<16x2xf32> to vector<16x1xf32>
    %90 = vector.extract_strided_slice %88 {offsets = [0, 1], sizes = [16, 1], strides = [1, 1]} : vector<16x2xf32> to vector<16x1xf32>
    %91 = arith.subf %89, %90 : vector<16x1xf32>
    %cst_42 = arith.constant 5.000000e-01 : f32
    %92 = vector.broadcast %cst_42 : f32 to vector<16x1xf32>
    %93 = arith.mulf %92, %91 : vector<16x1xf32>
    %94 = math.tanh %93 : vector<16x1xf32>
    %cst_43 = arith.constant 5.000000e-01 : f32
    %95 = vector.broadcast %cst_43 : f32 to vector<16x1xf32>
    %96 = arith.mulf %95, %94 : vector<16x1xf32>
    %cst_44 = arith.constant 5.000000e-01 : f32
    %97 = vector.broadcast %cst_44 : f32 to vector<16x1xf32>
    %98 = arith.addf %96, %97 : vector<16x1xf32>
    %cst_45 = arith.constant 1.000000e+00 : f32
    %99 = vector.broadcast %cst_45 : f32 to vector<16x1xf32>
    %100 = arith.subf %99, %98 : vector<16x1xf32>
    %101 = tpu.concatenate %98, %100 in 1 : vector<16x1xf32>, vector<16x1xf32> -> vector<16x2xf32>
    %c0_46 = arith.constant 0 : index
    %c0_47 = arith.constant 0 : index
    %102 = vector.load %arg5[%c0_46, %c0_47] : memref<16x2xf32, #tpu.memory_space<vmem>>, vector<16x2xf32>
    tpu.vector_store %arg5[%c0_46, %c0_47], %101 {strides = array<i32>} : memref<16x2xf32, #tpu.memory_space<vmem>>, vector<16x2xf32>,
    return
  }
}

</mosaic_0001>

<bundles_post_ra>
// kernel: hsn_forward.1
= control target key start
LH: loop header
LB: loop body
LE: loop exit
PB: predicated region body
PF: predicated region fallthrough
CT: control target
= control target key end

     0   :  { %s608_s22 = smov 112   ;;  %vm46_vm0 = vcmask 261120   ;;  %s610_s27 = smov 64   ;;  %vm77_vm1 = vcmask 130048   ;;  %vm223_vm2 = vcmask 1043456   ;;  %vm220_vm3 = vcmask 326656   ;;  %s721_s1 = inlined_call_operand.vmem [shape: bf16[16,40], index: 1, kind: input, shape index: {}]   ;;  %s722_s2 = inlined_call_operand.vmem [shape: bf16[2,32,128], index: 2, kind: input, shape index: {}]   ;;  %s723_s0 = inlined_call_operand.vmem [shape: bf16[16,32], index: 0, kind: input, shape index: {}]   ;;  %s724_s4 = inlined_call_operand.vmem [shape: f32[1,2], index: 4, kind: input, shape index: {}]   ;;  %s725_s3 = inlined_call_operand.vmem [shape: bf16[32,2], index: 3, kind: input, shape index: {}]   ;;  %s726_s5 = inlined_call_operand.vmem [shape: f32[16,2], index: 5, kind: output, shape index: {}]  }
   0x1   :  { %v647_v0 = vld [vmem:[%s721_s1] sm:$0xff]  ;;  %v563_v1 = vld [vmem:[%s722_s2 + $0x8] sm:$0xff]  ;;  %s609_s1 = smov 96   ;;  %v565_v58 = vld [vmem:[%s722_s2 + $0x18] sm:$0xff]  ;;  %s613_s12 = smov 1   ;;  %vm497_vm4 = vcmask 7168  }
   0x2   :  { %103 = vrot.lane.b32.xlu0 %v647_v0, %s608_s22  ;;  %56 = vmatpush.bf16.msra.mxu0 %v563_v1  ;;  %v562_v2 = vld [vmem:[%s722_s2] sm:$0xff]  ;;  %v564_v59 = vld [vmem:[%s722_s2 + $0x10] sm:$0xff]  ;;  %vm500_vm5 = vcmask 15360  }
   0x3   :  { %v561_v3 = vld [vmem:[%s723_s0] sm:$0xff]  ;;  %s611_s0 = smov 32  }
   0x4   :  { %187 = vrot.lane.b32.xlu2 %v562_v2, %s611_s0 }
   0x6   :  { %57 = vmatpush.bf16.msra.mxu0 %v562_v2 }
   0x9   :  { %519 = vmatmul.msk.bf16.vlgmr.msra.gmra.mxu0 %vm46_vm0, %v561_v3 }
   0xc   :  { %164 = vrot.lane.b32.xlu2 %v563_v1, %s610_s27 }
  0x5e   :  { %v188_v17 = vpop.permute.xlu2 %187 }
  0x66   :  { %v165_v22 = vpop.permute.xlu2 %164 }
  0x67   :  { %177 = vmatpush.bf16.msra.mxu3 %v165_v22 }
  0x74   :  { %v104_v4 = vpop.permute.xlu0 %103 }
  0x75   :  { %106 = vxpose.xlu1.c.b16.start.end [1/1] (short) (narrow) %v104_v4, 32 }
  0x86   :  { %v59_v5 = vpop.f32.mrf.mxu0 }
  0x87   :  { %v64_v6 = vpack.c.bf16 %v59_v5, %v59_v5 }
  0x89   :  { %v73_v8 = vunpack.c.l.b16 %v64_v6 }
  0x8e   :  { %v61_v7 = vpop.f32.mrf.mxu0 }
  0x8f   :  { %v65_v9 = vpack.c.bf16 %v61_v7, %v61_v7 }
  0x91   :  { %v74_v10 = vunpack.c.l.b16 %v65_v9 }
  0x93   :  { %v75_v11 = vpack.c.b16 %v74_v10, %v73_v8 }
  0x95   :  { %122 = vrot.lane.b32.xlu0 %v75_v11, %s609_s1  ;;  %88 = vmatpush.bf16.msra.mxu1 %v75_v11 }
  0x98   :  { %524 = vmatmul.msk.bf16.vlgmr.msra.gmra.mxu1 %vm77_vm1, %v647_v0 }
  0x9d   :  { %162 = vrot.lane.b32.xlu0 %v562_v2, %s610_s27 }
  0xa5   :  { %375 = vrot.lane.b32.xlu0 %v565_v58, %s611_s0 }
  0xad   :  { %350 = vrot.lane.b32.xlu0 %v565_v58, %s610_s27 }
  0xdf   :  { %189 = vrot.lane.b32.xlu1 %v563_v1, %s611_s0 }
 0x107   :  { %v123_v12 = vpop.permute.xlu0 %122 }
 0x108   :  { %138 = vmatpush.bf16.msra.mxu2 %v123_v12 }
 0x10f   :  { %v163_v28 = vpop.permute.xlu0 %162 }
 0x110   :  { %178 = vmatpush.bf16.msra.mxu3 %v163_v28 }
 0x114   :  { %276 = vmatpush.bf16.msrb.mxu3 %v565_v58 }
 0x115   :  { %v90_v15 = vpop.f32.mrf.mxu1 }
 0x116   :  { %v95_v16 = vmul.f32 0.5, %v90_v15 }
 0x118   :  { %576 = vtanh.f32 %v95_v16  ;;  %277 = vmatpush.bf16.msrb.mxu3 %v564_v59 }
 0x11d   :  { %v92_v18 = vpop.f32.mrf.mxu1 }
 0x11e   :  { %v96_v19 = vmul.f32 0.5, %v92_v18  ;;  %v577_v20 = vpop.eup %576 }
 0x11f   :  { %v99_v21 = vmul.f32 0.5, %v577_v20 }
 0x120   :  { %578 = vtanh.f32 %v96_v19  ;;  %v376_v19 = vpop.permute.xlu0 %375 }
 0x121   :  { %v667_v13 = vpop.trf.xlu1  ;;  %v101_v24 = vadd.f32 0.5, %v99_v21 }
 0x122   :  { %525 = vmatmul.msk.bf16.vlgmr.msra.gmra.mxu2 %vm77_vm1, %v667_v13 }
 0x126   :  { %v579_v23 = vpop.eup %578 }
 0x127   :  { %v100_v25 = vmul.f32 0.5, %v579_v23 }
 0x129   :  { %v102_v26 = vadd.f32 0.5, %v100_v25 }
 0x12b   :  { %v161_v29 = vpack.c.bf16 %v102_v26, %v101_v24  ;;  %v351_v24 = vpop.permute.xlu0 %350 }
 0x12d   :  { %527 = vmatmul.msk.bf16.vlgmr.msra.gmra.mxu3 %vm46_vm0, %v161_v29 }
 0x12e   :  { %363 = vmatpush.bf16.msra.mxu3 %v351_v24 }
 0x131   :  { %v671_v14 = vpop.trf.xlu1 }
 0x132   :  { %526 = vmatmul.msk.bf16.gmra.mxu2 %vm77_vm1, %v671_v14 }
 0x151   :  { %v190_v27 = vpop.permute.xlu1 %189 }
 0x152   :  { %205 = vmatpush.bf16.msrb.mxu1 %v190_v27 }
 0x156   :  { %206 = vmatpush.bf16.msrb.mxu1 %v188_v17 }
 0x15a   :  { %391 = vmatpush.bf16.msra.mxu1 %v376_v19 }
 0x1a5   :  { %v140_v30 = vpop.f32.mrf.mxu2 }
 0x1a6   :  { %v149_v31 = vmul.f32 0.5, %v140_v30 }
 0x1a8   :  { %580 = vtanh.f32 %v149_v31 }
 0x1ad   :  { %v142_v32 = vpop.f32.mrf.mxu2 }
 0x1ae   :  { %v150_v33 = vmul.f32 0.5, %v142_v32  ;;  %v581_v34 = vpop.eup %580 }
 0x1af   :  { %v155_v35 = vmul.f32 0.5, %v581_v34 }
 0x1b0   :  { %582 = vtanh.f32 %v150_v33  ;;  %v180_v50 = vpop.f32.mrf.mxu3 }
 0x1b1   :  { %v158_v40 = vadd.f32 0.5, %v155_v35 }
 0x1b5   :  { %v145_v36 = vpop.f32.mrf.mxu2 }
 0x1b6   :  { %v583_v37 = vpop.eup %582  ;;  %v151_v38 = vmul.f32 0.5, %v145_v36 }
 0x1b7   :  { %v156_v39 = vmul.f32 0.5, %v583_v37 }
 0x1b8   :  { %584 = vtanh.f32 %v151_v38  ;;  %v182_v55 = vpop.f32.mrf.mxu3 }
 0x1b9   :  { %v159_v41 = vadd.f32 0.5, %v156_v39  ;;  %v217_v57 = vpack.c.bf16 %v182_v55, %v180_v50 }
 0x1bb   :  { %v185_v42 = vpack.c.bf16 %v159_v41, %v158_v40 }
 0x1bd   :  { %v147_v43 = vpop.f32.mrf.mxu2  ;;  %528 = vmatmul.msk.bf16.vlgmr.msrb.gmra.mxu1 %vm46_vm0, %v185_v42 }
 0x1be   :  { %v585_v44 = vpop.eup %584 }
 0x1bf   :  { %v157_v45 = vmul.f32 0.5, %v585_v44 }
 0x1c1   :  { %v160_v46 = vadd.f32 0.5, %v157_v45 }
 0x1c3   :  { %v186_v47 = vpack.c.bf16 %v160_v46, %v160_v46 }
 0x1cd   :  { %529 = vmatmul.msk.bf16.gmra.mxu1 %vm46_vm0, %v186_v47 }
 0x23a   :  { %v208_v48 = vpop.f32.mrf.mxu1 }
 0x242   :  { %v210_v49 = vpop.f32.mrf.mxu1 }
 0x243   :  { %v218_v54 = vpack.c.bf16 %v210_v49, %v208_v48 }
 0x24a   :  { %v213_v51 = vpop.f32.mrf.mxu1 }
 0x24b   :  { %v219_v52 = vpack.c.bf16 %v213_v51, %v213_v51 }
 0x24d   :  { %v225_v53 = vsel %vm223_vm2, %v219_v52, 0 }
 0x24e   :  { %232 = vmatpush.bf16.msrb.mxu0 %v225_v53 }
 0x252   :  { %v215_v56 = vpop.f32.mrf.mxu1  ;;  %233 = vmatpush.bf16.msrb.mxu0 %v218_v54 }
 0x256   :  { %234 = vmatpush.bf16.msrb.mxu0 %v217_v57 }
 0x259   :  { %530 = vmatmul.msk.bf16.vlgmr.msrb.gmra.mxu0 %vm220_vm3, %v647_v0 }
 0x2d6   :  { %v236_v60 = vpop.f32.mrf.mxu0 }
 0x2d7   :  { %v241_v61 = vmul.f32 0.5, %v236_v60  ;;  %v566_v60 = vld [vmem:[%s725_s3] sm:$0xff] }
 0x2d9   :  { %586 = vtanh.f32 %v241_v61 }
 0x2de   :  { %v238_v62 = vpop.f32.mrf.mxu0 }
 0x2df   :  { %v242_v63 = vmul.f32 0.5, %v238_v62  ;;  %v587_v1 = vpop.eup %586 }
 0x2e0   :  { %v245_v2 = vmul.f32 0.5, %v587_v1 }
 0x2e1   :  { %588 = vtanh.f32 %v242_v63 }
 0x2e2   :  { %v247_v5 = vadd.f32 0.5, %v245_v2 }
 0x2e7   :  { %v589_v3 = vpop.eup %588 }
 0x2e8   :  { %v246_v4 = vmul.f32 0.5, %v589_v3 }
 0x2ea   :  { %v248_v6 = vadd.f32 0.5, %v246_v4 }
 0x2ec   :  { %v249_v7 = vpack.c.bf16 %v248_v6, %v247_v5 }
 0x2ee   :  { %543 = vmatmul.msk.bf16.vlgmr.msrb.gmra.mxu3 %vm46_vm0, %v249_v7 }
 0x371   :  { %v279_v8 = vpop.f32.mrf.mxu3 }
 0x372   :  { %v284_v9 = vpack.c.bf16 %v279_v8, %v279_v8  ;;  %v575_v8 = vld [vmem:[%s724_s4] ss:$0 sm:$0xff] }
 0x374   :  { %v288_v12 = vunpack.c.l.b16 %v284_v9 }
 0x379   :  { %v281_v10 = vpop.f32.mrf.mxu3 }
 0x37a   :  { %v285_v11 = vpack.c.bf16 %v281_v10, %v281_v10 }
 0x37c   :  { %v289_v15 = vunpack.c.l.b16 %v285_v11 }
 0x37e   :  { %v290_v16 = vpack.c.b16 %v289_v15, %v288_v12 }
 0x380   :  { %314 = vrot.lane.b32.xlu2 %v290_v16, %s609_s1  ;;  %299 = vmatpush.bf16.msrb.mxu2 %v290_v16 }
 0x383   :  { %544 = vmatmul.msk.bf16.vlgmr.msrb.gmra.mxu2 %vm77_vm1, %v647_v0 }
 0x388   :  { %373 = vrot.lane.b32.xlu2 %v564_v59, %s611_s0 }
 0x390   :  { %348 = vrot.lane.b32.xlu2 %v564_v59, %s610_s27  ;;  %v567_v59 = vld [vmem:[%s725_s3 + $0x8] sm:$0xff]  ;;  %s612_s3 = smov 127  }
 0x3da   :  { %v315_v17 = vpop.permute.xlu2 %314 }
 0x3db   :  { %324 = vmatpush.bf16.msra.mxu0 %v315_v17 }
 0x3de   :  { %545 = vmatmul.msk.bf16.vlgmr.msra.gmra.mxu0 %vm77_vm1, %v667_v13 }
 0x3e2   :  { %v374_v23 = vpop.permute.xlu2 %373 }
 0x3e3   :  { %392 = vmatpush.bf16.msra.mxu1 %v374_v23 }
 0x3ea   :  { %v349_v29 = vpop.permute.xlu2 %348 }
 0x3eb   :  { %364 = vmatpush.bf16.msra.mxu3 %v349_v29 }
 0x3ee   :  { %546 = vmatmul.msk.bf16.gmra.mxu0 %vm77_vm1, %v671_v14 }
 0x3ef   :  { %461 = vmatpush.bf16.msrb.mxu3 %v567_v59 }
 0x3f3   :  { %462 = vmatpush.bf16.msrb.mxu3 %v566_v60 }
 0x406   :  { %v301_v18 = vpop.f32.mrf.mxu2 }
 0x407   :  { %v306_v21 = vmul.f32 0.5, %v301_v18 }
 0x409   :  { %590 = vtanh.f32 %v306_v21 }
 0x40e   :  { %v303_v20 = vpop.f32.mrf.mxu2 }
 0x40f   :  { %v307_v22 = vmul.f32 0.5, %v303_v20  ;;  %v591_v25 = vpop.eup %590 }
 0x410   :  { %v310_v27 = vmul.f32 0.5, %v591_v25 }
 0x411   :  { %592 = vtanh.f32 %v307_v22 }
 0x412   :  { %v312_v13 = vadd.f32 0.5, %v310_v27 }
 0x417   :  { %v593_v26 = vpop.eup %592 }
 0x418   :  { %v311_v28 = vmul.f32 0.5, %v593_v26 }
 0x41a   :  { %v313_v30 = vadd.f32 0.5, %v311_v28 }
 0x41c   :  { %v347_v14 = vpack.c.bf16 %v313_v30, %v312_v13 }
 0x41e   :  { %547 = vmatmul.msk.bf16.vlgmr.msra.gmra.mxu3 %vm46_vm0, %v347_v14 }
 0x45b   :  { %v326_v31 = vpop.f32.mrf.mxu0 }
 0x45c   :  { %v335_v32 = vmul.f32 0.5, %v326_v31 }
 0x45e   :  { %594 = vtanh.f32 %v335_v32 }
 0x463   :  { %v328_v33 = vpop.f32.mrf.mxu0 }
 0x464   :  { %v336_v34 = vmul.f32 0.5, %v328_v33  ;;  %v595_v35 = vpop.eup %594 }
 0x465   :  { %v341_v36 = vmul.f32 0.5, %v595_v35 }
 0x466   :  { %596 = vtanh.f32 %v336_v34 }
 0x467   :  { %v344_v41 = vadd.f32 0.5, %v341_v36 }
 0x46b   :  { %v331_v37 = vpop.f32.mrf.mxu0 }
 0x46c   :  { %v597_v38 = vpop.eup %596  ;;  %v337_v39 = vmul.f32 0.5, %v331_v37 }
 0x46d   :  { %v342_v40 = vmul.f32 0.5, %v597_v38 }
 0x46e   :  { %598 = vtanh.f32 %v337_v39 }
 0x46f   :  { %v345_v42 = vadd.f32 0.5, %v342_v40 }
 0x471   :  { %v371_v43 = vpack.c.bf16 %v345_v42, %v344_v41 }
 0x473   :  { %v333_v44 = vpop.f32.mrf.mxu0  ;;  %548 = vmatmul.msk.bf16.vlgmr.msra.gmra.mxu1 %vm46_vm0, %v371_v43 }
 0x474   :  { %v599_v45 = vpop.eup %598 }
 0x475   :  { %v343_v46 = vmul.f32 0.5, %v599_v45 }
 0x477   :  { %v346_v47 = vadd.f32 0.5, %v343_v46 }
 0x479   :  { %v372_v48 = vpack.c.bf16 %v346_v47, %v346_v47 }
 0x483   :  { %549 = vmatmul.msk.bf16.gmra.mxu1 %vm46_vm0, %v372_v48 }
 0x4a1   :  { %v366_v51 = vpop.f32.mrf.mxu3 }
 0x4a9   :  { %v368_v56 = vpop.f32.mrf.mxu3 }
 0x4aa   :  { %v403_v58 = vpack.c.bf16 %v368_v56, %v366_v51 }
 0x4f0   :  { %v394_v49 = vpop.f32.mrf.mxu1 }
 0x4f8   :  { %v396_v50 = vpop.f32.mrf.mxu1 }
 0x4f9   :  { %v404_v55 = vpack.c.bf16 %v396_v50, %v394_v49 }
 0x500   :  { %v399_v52 = vpop.f32.mrf.mxu1 }
 0x501   :  { %v405_v53 = vpack.c.bf16 %v399_v52, %v399_v52 }
 0x503   :  { %v407_v54 = vsel %vm223_vm2, %v405_v53, 0 }
 0x504   :  { %414 = vmatpush.bf16.msra.mxu2 %v407_v54 }
 0x508   :  { %v401_v57 = vpop.f32.mrf.mxu1  ;;  %415 = vmatpush.bf16.msra.mxu2 %v404_v55 }
 0x50c   :  { %416 = vmatpush.bf16.msra.mxu2 %v403_v58 }
 0x50f   :  { %550 = vmatmul.msk.bf16.vlgmr.msra.gmra.mxu2 %vm220_vm3, %v647_v0 }
 0x592   :  { %v418_v61 = vpop.f32.mrf.mxu2 }
 0x593   :  { %v423_v62 = vmul.f32 0.5, %v418_v61 }
 0x595   :  { %600 = vtanh.f32 %v423_v62 }
 0x59a   :  { %v420_v63 = vpop.f32.mrf.mxu2 }
 0x59b   :  { %v424_v1 = vmul.f32 0.5, %v420_v63  ;;  %v601_v2 = vpop.eup %600 }
 0x59c   :  { %v427_v3 = vmul.f32 0.5, %v601_v2 }
 0x59d   :  { %602 = vtanh.f32 %v424_v1 }
 0x59e   :  { %v429_v5 = vadd.f32 0.5, %v427_v3 }
 0x5a3   :  { %v603_v4 = vpop.eup %602 }
 0x5a4   :  { %v428_v0 = vmul.f32 0.5, %v603_v4 }
 0x5a6   :  { %v430_v6 = vadd.f32 0.5, %v428_v0 }
 0x5a8   :  { %v431_v7 = vpack.c.bf16 %v430_v6, %v429_v5 }
 0x5aa   :  { %559 = vmatmul.msk.bf16.vlgmr.msrb.gmra.mxu3 %vm46_vm0, %v431_v7 }
 0x62d   :  { %v464_v9 = vpop.f32.mrf.mxu3 }
 0x62e   :  { %v465_v10 = vadd.f32 %v575_v8, %v464_v9 }
 0x630   :  { %471 = vrot.lane.b32.xlu0 %v465_v10, %s612_s3 }
 0x635   :  { %v466_v11 = vpop.f32.mrf.mxu3 }
 0x636   :  { %v467_v12 = vadd.f32 %v575_v8, %v466_v11 }
 0x638   :  { %473 = vrot.lane.b32.xlu2 %v467_v12, %s612_s3 }
 0x692   :  { %v474_v15 = vpop.permute.xlu2 %473 }
 0x693   :  { %v478_v16 = vsub.f32 %v467_v12, %v474_v15 }
 0x695   :  { %v480_v17 = vmul.f32 0.5, %v478_v16 }
 0x697   :  { %604 = vtanh.f32 %v480_v17 }
 0x69d   :  { %v605_v18 = vpop.eup %604 }
 0x69e   :  { %v484_v19 = vmul.f32 0.5, %v605_v18 }
 0x6a0   :  { %v486_v20 = vadd.f32 0.5, %v484_v19 }
 0x6a2   :  { %v472_v21 = vpop.permute.xlu0 %471  ;;  %v488_v22 = vsub.f32 1.0, %v486_v20 }
 0x6a3   :  { %v477_v23 = vsub.f32 %v465_v10, %v472_v21 }
 0x6a4   :  { %493 = vrot.lane.b32.xlu2 %v488_v22, %s613_s12 }
 0x6a5   :  { %v479_v24 = vmul.f32 0.5, %v477_v23 }
 0x6a7   :  { %606 = vtanh.f32 %v479_v24 }
 0x6ad   :  { %v607_v25 = vpop.eup %606 }
 0x6ae   :  { %v483_v26 = vmul.f32 0.5, %v607_v25 }
 0x6b0   :  { %v485_v27 = vadd.f32 0.5, %v483_v26 }
 0x6b2   :  { %v487_v28 = vsub.f32 1.0, %v485_v27 }
 0x6b4   :  { %491 = vrot.lane.b32.xlu0 %v487_v28, %s613_s12 }
 0x6fe   :  { %v494_v13 = vpop.permute.xlu2 %493 }
 0x6ff   :  { %v499_v29 = vsel %vm497_vm4, %v486_v20, %v494_v13 }
 0x700   :  { %502 = vst.msk [vmem:[%s726_s5 + $0x8] sm:$0xff] %vm500_vm5, %v499_v29 }
 0x726   :  { %v492_v30 = vpop.permute.xlu0 %491 }
 0x727   :  { %v498_v14 = vsel %vm497_vm4, %v485_v27, %v492_v30 }
 0x728   :  { %501 = vst.msk [vmem:[%s726_s5] sm:$0xff] %vm500_vm5, %v498_v14 }

</bundles_post_ra>
